<compile_context>
chip_gen: v6e
topology: v6e:2x2x1
jax: 0.10.0
libtpu: 0.0.40
codegen_flags: <defaults>
</compile_context>

<pallas_src>
import functools

import jax
import jax.numpy as jnp
from jax.experimental import pallas as pl
from jax.experimental.pallas import tpu as pltpu


def _round_up(x, m):
    return ((x + m - 1) // m) * m


def _largest_divisor_at_most(n, cap):
    cap = max(1, min(n, cap))
    for d in range(cap, 0, -1):
        if n % d == 0:
            return d
    return 1


def _channel_sum_kernel(x_ref, out_ref, *, hw, lane_tile, mask_tail):
    """Accumulate per-channel sums of the gate.

    x_ref:   (bb, 3, lane_tile) block of the (B, 3, H*W) gate slab
    out_ref: (3, 1) running per-channel sums.  The output block index is constant
             across the grid, so it stays resident in VMEM (accumulator pattern)
             and is written back to HBM once at the end.
    """
    bi = pl.program_id(0)
    ti = pl.program_id(1)

    @pl.when(jnp.logical_and(bi == 0, ti == 0))
    def _init():
        out_ref[...] = jnp.zeros_like(out_ref)

    x = x_ref[...].astype(jnp.float32)  # (bb, 3, lane_tile)

    if mask_tail:
        # The last spatial tile may extend past H*W: those lanes are unspecified
        # VMEM contents, so mask them before accumulating.
        lane = jax.lax.broadcasted_iota(jnp.int32, x.shape, dimension=2)
        x = jnp.where(ti * lane_tile + lane < hw, x, 0.0)

    # Combine batch items with VPU adds, then a single cross-lane reduce per step.
    s = jnp.sum(x, axis=0)                                # (3, lane_tile)
    out_ref[...] += jnp.sum(s, axis=-1, keepdims=True)    # (3, 1)


@functools.partial(
    jax.jit,
    static_argnames=(
        "target_fine_ratio",
        "target_median_ratio",
        "gamma",
        "min_grain_size",
        "median_grain_size",
        "max_grain_size",
        "lane_tile_max",
        "small_n_threshold",
    ),
)
def budget_constraint_loss(
    gate,
    target_fine_ratio=0.0,
    target_median_ratio=0.0,
    gamma=1.0,
    min_grain_size=8,
    median_grain_size=16,
    max_grain_size=32,
    lane_tile_max=32768,
    small_n_threshold=16384,
):
    assert target_fine_ratio + target_median_ratio <= 1.0
    B, C, H, W = gate.shape
    assert C == 3, "triple-grain gate must have 3 channels"

    min_const = float(min_grain_size**2)
    median_const = float(median_grain_size**2) - min_const
    max_const = float(max_grain_size**2) - min_const

    def finalize(gate_sum):
        beta_median = gate_sum[0] + 4.0 * gate_sum[1] + gate_sum[2] - min_const
        budget_ratio_median = beta_median / median_const
        beta_fine = gate_sum[0] + 16.0 * gate_sum[2] + gate_sum[1] - min_const
        budget_ratio_fine = beta_fine / max_const
        loss_median = (budget_ratio_median - target_median_ratio) ** 2
        loss_fine = gamma * (budget_ratio_fine - target_fine_ratio) ** 2
        return loss_fine + loss_median

    # ---- small-input fast path: kernel launch cost dwarfs the arithmetic ------------
    if gate.size <= small_n_threshold:
        gate_sum = jnp.sum(gate.astype(jnp.float32), axis=(0, 2, 3)) / B
        return finalize(gate_sum)

    # ---- Pallas kernel path: stream the gate once, no transpose / channel pad -------
    hw = H * W
    x = gate.reshape(B, 3, hw)  # contiguous reshape of NCHW: no data movement

    lane_tile = min(_round_up(hw, 128), _round_up(lane_tile_max, 128))
    n_hw_tiles = -(-hw // lane_tile)
    mask_tail = (hw % lane_tile) != 0

    # Batch items per block: keep the double-buffered, sublane-padded (3 -> 8) input
    # buffers around <= 8 MiB total so default scoped-VMEM limits are fine everywhere.
    vmem_budget_per_buffer = 4 * 1024 * 1024
    bb_cap = max(1, vmem_budget_per_buffer // (8 * lane_tile * 4))
    bb = _largest_divisor_at_most(B, bb_cap)

    kernel = functools.partial(
        _channel_sum_kernel, hw=hw, lane_tile=lane_tile, mask_tail=mask_tail
    )

    sums = pl.pallas_call(
        kernel,
        out_shape=jax.ShapeDtypeStruct((3, 1), jnp.float32),
        grid_spec=pltpu.PrefetchScalarGridSpec(
            num_scalar_prefetch=0,
            grid=(B // bb, n_hw_tiles),
            in_specs=[pl.BlockSpec((bb, 3, lane_tile), lambda b, t: (b, 0, t))],
            out_specs=pl.BlockSpec((3, 1), lambda b, t: (0, 0)),
        ),
        compiler_params=pltpu.CompilerParams(
            dimension_semantics=("arbitrary", "arbitrary"),
        ),
    )(x)

    gate_sum = sums[:, 0] / B
    return finalize(gate_sum)


def _reference_loss(
    gate,
    target_fine_ratio=0.0,
    target_median_ratio=0.0,
    gamma=1.0,
    min_grain_size=8,
    median_grain_size=16,
    max_grain_size=32,
):
    """Pure-JAX transcription of the PyTorch forward (for correctness check)."""
    B = gate.shape[0]
    min_const = min_grain_size**2
    median_const = median_grain_size**2 - min_const
    max_const = max_grain_size**2 - min_const
    gate_sum = gate.astype(jnp.float32).sum(axis=(0, 2, 3)) / B
    beta_median = gate_sum[0] + 4.0 * gate_sum[1] + gate_sum[2] - min_const
    budget_ratio_median = beta_median / median_const
    beta_fine = gate_sum[0] + 16.0 * gate_sum[2] + gate_sum[1] - min_const
    budget_ratio_fine = beta_fine / max_const
    loss_budget_median = (budget_ratio_median - target_median_ratio) ** 2
    loss_budget_fine = gamma * (budget_ratio_fine - target_fine_ratio) ** 2
    return loss_budget_fine + loss_budget_median


if __name__ == "__main__":
    kwargs = dict(target_fine_ratio=0.3, target_median_ratio=0.2, gamma=1.5)
    key0, key1 = jax.random.split(jax.random.PRNGKey(0))

    # Small gate consistent with the module: (B=2, grain-channels=3, H=16, W=16),
    # softmax over channels so it looks like real gate probabilities.
    logits = jax.random.normal(key0, (2, 3, 16, 16), dtype=jnp.float32)
    gate = jax.nn.softmax(logits, axis=1)

    # Force the Pallas kernel path (default dispatch would take the small-N fast path).
    loss = budget_constraint_loss(gate, small_n_threshold=0, **kwargs)
    jax.block_until_ready(loss)
    ref = _reference_loss(gate, **kwargs)
    assert jnp.allclose(loss, ref, rtol=1e-4, atol=1e-5), (loss, ref)

    # Exercise the masked tail tile (hw not a multiple of the lane tile) and the
    # multi-tile accumulation path with several batch items packed per block.
    gate2 = jax.nn.softmax(
        jax.random.normal(key1, (4, 3, 20, 20), dtype=jnp.float32), axis=1
    )
    loss2 = budget_constraint_loss(
        gate2, small_n_threshold=0, lane_tile_max=128, **kwargs
    )
    jax.block_until_ready(loss2)
    ref2 = _reference_loss(gate2, **kwargs)
    assert jnp.allclose(loss2, ref2, rtol=1e-4, atol=1e-5), (loss2, ref2)

    # Default dispatch (small-N pure-JAX fast path) must agree as well.
    loss3 = budget_constraint_loss(gate, **kwargs)
    jax.block_until_ready(loss3)
    assert jnp.allclose(loss3, ref, rtol=1e-4, atol=1e-5), (loss3, ref)

    print("KERNEL_OK")
</pallas_src>

<mosaic_0001>
module attributes {stable_mosaic.version = 11 : i64} {
  func.func @_channel_sum_kernel(%arg0: i32, %arg1: i32, %arg2: memref<2x3x256xf32, #tpu.memory_space<vmem>>, %arg3: memref<3x1xf32, #tpu.memory_space<vmem>>) attributes {dimension_semantics = [#tpu.dimension_semantics<arbitrary>, #tpu.dimension_semantics<arbitrary>], iteration_bounds = array<i64: 1, 1>, scalar_prefetch = 0 : i64, scratch_operands = 0 : i64, tpu.core_type = #tpu.core_type<tc>, window_params = [{transform_indices = @transform_0, window_bounds = array<i64: 2, 3, 256>}, {pipeline_mode = #tpu.pipeline_mode<synchronous>, transform_indices = @transform_1, window_bounds = array<i64: 3, 1>}]} {
    %c0_i32 = arith.constant 0 : i32
    %0 = arith.cmpi eq, %arg0, %c0_i32 : i32
    %c0_i32_0 = arith.constant 0 : i32
    %1 = arith.cmpi eq, %arg1, %c0_i32_0 : i32
    %2 = arith.andi %0, %1 : i1
    %3 = arith.extui %2 : i1 to i32
    %c0_i32_1 = arith.constant 0 : i32
    %4 = arith.cmpi ne, %3, %c0_i32_1 : i32
    scf.if %4 {
      %cst_9 = arith.constant 0.000000e+00 : f32
      %12 = vector.broadcast %cst_9 : f32 to vector<3x1xf32>
      %c0_10 = arith.constant 0 : index
      %c0_11 = arith.constant 0 : index
      %13 = vector.load %arg3[%c0_10, %c0_11] : memref<3x1xf32, #tpu.memory_space<vmem>>, vector<3x1xf32>
      tpu.vector_store %arg3[%c0_10, %c0_11], %12 {strides = array<i32>} : memref<3x1xf32, #tpu.memory_space<vmem>>, vector<3x1xf32>,
    } else {
    }
    %c0 = arith.constant 0 : index
    %c0_2 = arith.constant 0 : index
    %c0_3 = arith.constant 0 : index
    %5 = vector.load %arg2[%c0, %c0_2, %c0_3] : memref<2x3x256xf32, #tpu.memory_space<vmem>>, vector<2x3x256xf32>
    %cst = arith.constant dense<0.000000e+00> : vector<3x256xf32>
    %6 = vector.multi_reduction <add>, %5, %cst [0] : vector<2x3x256xf32> to vector<3x256xf32>
    %c0_4 = arith.constant 0 : index
    %c0_5 = arith.constant 0 : index
    %7 = vector.load %arg3[%c0_4, %c0_5] : memref<3x1xf32, #tpu.memory_space<vmem>>, vector<3x1xf32>
    %cst_6 = arith.constant dense<0.000000e+00> : vector<3xf32>
    %8 = vector.multi_reduction <add>, %6, %cst_6 [1] : vector<3x256xf32> to vector<3xf32>
    %9 = vector.shape_cast %8 : vector<3xf32> to vector<3x1xf32>
    %10 = arith.addf %7, %9 : vector<3x1xf32>
    %c0_7 = arith.constant 0 : index
    %c0_8 = arith.constant 0 : index
    %11 = vector.load %arg3[%c0_7, %c0_8] : memref<3x1xf32, #tpu.memory_space<vmem>>, vector<3x1xf32>
    tpu.vector_store %arg3[%c0_7, %c0_8], %10 {strides = array<i32>} : memref<3x1xf32, #tpu.memory_space<vmem>>, vector<3x1xf32>,
    return
  }
  func.func @transform_0(%arg0: i32, %arg1: i32) -> (i32, i32, i32) {
    %c0_i32 = arith.constant 0 : i32
    %c0_i32_0 = arith.constant 0 : i32
    return %arg0, %c0_i32, %arg1 : i32, i32, i32
  }
  func.func @transform_1(%arg0: i32, %arg1: i32) -> (i32, i32) {
    %c0_i32 = arith.constant 0 : i32
    %c0_i32_0 = arith.constant 0 : i32
    %c0_i32_1 = arith.constant 0 : i32
    return %c0_i32, %c0_i32_0 : i32, i32
  }
}

</mosaic_0001>

<bundles_post_ra>
// kernel: budget_constraint_loss.1
= control target key start
LH: loop header
LB: loop body
LE: loop exit
PB: predicated region body
PF: predicated region fallthrough
CT: control target
= control target key end

     0   :  { %vm24_vm0 = vcmask 1042432   ;;  %vm14_vm1 = vcmask 2048   ;;  %v47_v2 = vmov 0.0   ;;  %s81_s0 = inlined_call_operand.vmem [shape: f32[2,3,256], index: 0, kind: input, shape index: {}]   ;;  %s82_s1 = inlined_call_operand.vmem [shape: f32[3,1], index: 1, kind: output, shape index: {}]  }
   0x1   :  { %v16_v0 = vld [vmem:[%s81_s0] sm:$0x77]  ;;  %v17_v1 = vld [vmem:[%s81_s0 + $0x8] sm:$0x77]  ;;  %15 = vst.msk [vmem:[%s82_s1] sm:$0x7] %vm14_vm1, %v47_v2 }
   0x2   :  { %v20_v3 = vcombine.high %v16_v0, %v16_v0  ;;  %v21_v4 = vcombine.high %v17_v1, %v17_v1  ;;  %v25_v5 = vsel %vm24_vm0, %v16_v0, 0.0  ;;  %v26_v6 = vsel %vm24_vm0, %v17_v1, 0.0 }
   0x3   :  { %v27_v7 = vadd.f32 %v26_v6, %v25_v5 }
   0x4   :  { %v28_v8 = vsel %vm24_vm0, %v20_v3, 0.0  ;;  %v29_v9 = vsel %vm24_vm0, %v21_v4, 0.0 }
   0x5   :  { %v30_v10 = vadd.f32 %v29_v9, %v28_v8  ;;  %v32_v11 = vsel %vm24_vm0, %v27_v7, 0.0 }
   0x7   :  { %v33_v12 = vsel %vm24_vm0, %v30_v10, 0.0 }
   0x8   :  { %v34_v13 = vadd.f32 %v33_v12, %v32_v11  ;;  %v31_v14 = vld [vmem:[%s82_s1] sm:$0x7] }
   0xa   :  { %35 = vadd.xlane.f32.xlu0 %v34_v13 }
  0x93   :  { %v36_v15 = vpop.xlane.xlu0 %35 }
  0x94   :  { %v37_v16 = vadd.f32 %v36_v15, %v31_v14 }
  0x96   :  { %39 = vst.msk [vmem:[%s82_s1] sm:$0x7] %vm14_vm1, %v37_v16 }

</bundles_post_ra>
